<compile_context>
chip_gen: v5e
topology: v5e:2x2
jax: 0.10.0
libtpu: 0.0.40
codegen_flags: <defaults>
</compile_context>

<pallas_src>
import functools
import math
import numpy as np
import jax
import jax.numpy as jnp
from jax.experimental import pallas as pl
from jax.experimental.pallas import tpu as pltpu


def _round_up(v, m):
    return ((v + m - 1) // m) * m


# ----------------------------------------------------------------------------
# Host-side construction of the (linear) crop+resample operators (pure math).
# ----------------------------------------------------------------------------
def _sinc(x):
    return np.where(x != 0, np.sin(np.pi * x) / (np.pi * x), 1.0)


def _lanczos(x, a):
    cond = np.logical_and(-a < x, x < a)
    out = np.where(cond, _sinc(x) * _sinc(x / a), 0.0)
    return out / out.sum()


def _ramp(ratio, width):
    n = math.ceil(width / ratio + 1)
    out = np.arange(n, dtype=np.float64) * ratio
    full = np.concatenate([-out[1:][::-1], out])
    return full[1:-1]


def _reflect_index(j, size):
    # torch 'reflect' padding (edge not repeated)
    if size == 1:
        return 0
    period = 2 * (size - 1)
    j = j % period
    if j >= size:
        j = period - j
    return j


def _antialias_matrix(src, dst):
    """Lanczos anti-alias operator (src -> src) matching resample()'s
    reflect-padded 1-D conv.  Identity when not downsampling."""
    if dst >= src:
        return np.eye(src, dtype=np.float64)
    k = _lanczos(_ramp(dst / src, 2), 2)
    pad = (k.shape[0] - 1) // 2
    L = np.zeros((src, src), dtype=np.float64)
    for i in range(src):
        for t in range(k.shape[0]):
            s = _reflect_index(i + t - pad, src)
            L[i, s] += k[t]
    return L


def _cubic_weights(t, A=-0.75):
    def c1(x):
        return ((A + 2) * x - (A + 3)) * x * x + 1

    def c2(x):
        return ((A * x - 5 * A) * x + 8 * A) * x - 4 * A

    return np.array([c2(t + 1.0), c1(t), c1(1.0 - t), c2(2.0 - t)], dtype=np.float64)


def _bicubic_matrix(src, dst, align_corners=True):
    """Linear operator (dst, src) equivalent to F.interpolate(mode='bicubic')."""
    B = np.zeros((dst, src), dtype=np.float64)
    scale = (src - 1) / (dst - 1) if (align_corners and dst > 1) else (0.0 if align_corners else src / dst)
    for i in range(dst):
        real = i * scale if align_corners else (i + 0.5) * scale - 0.5
        idx = int(math.floor(real))
        t = real - idx
        w = _cubic_weights(t)
        for k in range(4):
            s = min(max(idx - 1 + k, 0), src - 1)
            B[i, s] += w[k]
    return B


def _resample_matrix(src, dst):
    """Fused (anti-alias -> bicubic) operator along one axis: (dst, src)."""
    return _bicubic_matrix(src, dst) @ _antialias_matrix(src, dst)


# ----------------------------------------------------------------------------
# Pallas kernel: per (batch-tile, cutout-group) step
#     Y  = X @ Mw^T   (batch folded into M, N = pack*cut_p)
#     Z  = Y^T @ Mh^T (only the first cut_j rows of Y^T are non-zero)
#     O^T = clamp(Z, 0, 1)  stored in bf16; wrapper swaps the last two dims.
# ----------------------------------------------------------------------------
def _cutouts_kernel(mht_ref, mwt_ref, x_ref, o_ref):
    bt, sy, sx = x_ref.shape
    _, pack, _, cut_p = mht_ref.shape
    cut_j = o_ref.shape[-2]
    n_big = pack * cut_p

    x = x_ref[...]                                       # (bt, sy, sx)        bf16
    mwt = mwt_ref[0, :, :]                               # (sx, pack*cut_p)    bf16

    # W-resample: one large-M MXU matmul over the whole batch tile.
    y = jnp.dot(x.reshape(bt * sy, sx), mwt,
                preferred_element_type=jnp.float32)      # (bt*sy, n_big)      f32
    # Cast to bf16 BEFORE the transpose (half the XLU ops / vreg pressure).
    yb = y.astype(jnp.bfloat16).reshape(bt, sy, n_big)
    yt = jnp.swapaxes(yb, 1, 2)                          # (bt, n_big, sy)     bf16

    for p in range(pack):                                # static loop, pack in {1, 2}
        mht = mht_ref[0, p, :, :]                        # (sy, cut_p)         bf16
        # Operator columns >= cut are zero, so only the first cut_j rows of this
        # cutout's slice carry data -> smaller second matmul & smaller store.
        yt_p = yt[:, p * cut_p:p * cut_p + cut_j, :]     # (bt, cut_j, sy)
        z = jnp.dot(yt_p.reshape(bt * cut_j, sy), mht,
                    preferred_element_type=jnp.float32)  # (bt*cut_j, cut_p)   f32
        # z[b, j, i] == O_b[i, j]: store transposed, wrapper fixes last 2 dims.
        o_ref[0, p, :, :, :] = jnp.clip(z, 0.0, 1.0).reshape(
            bt, cut_j, cut_p).astype(o_ref.dtype)


# ----------------------------------------------------------------------------
# VMEM sizing (per TPU generation) and batch-tile selection.
# ----------------------------------------------------------------------------
def _vmem_plan():
    cap = 64 << 20
    try:
        cap = int(getattr(pltpu.get_tpu_info(), "vmem_capacity_bytes", cap))
    except Exception:
        cap = 64 << 20
    cap = max(cap, 32 << 20)
    tile_budget = int(cap * 0.45)                     # for sizing b_tile
    vmem_limit = int(min(cap * 0.75, cap - (8 << 20)))  # scoped limit we request
    return tile_budget, vmem_limit


def _choose_batch_tile(b, sy_p, sx_p, cut_j, cut_p, pack, budget):
    n_big = pack * cut_p
    fixed = 2 * (pack * sy_p * cut_p + sx_p * n_big) * 2      # operator dbl-buffers
    per_img = (2 * sy_p * sx_p * 2                # x bf16 (double-buffered)
               + sy_p * n_big * 4                 # y f32
               + 2 * sy_p * n_big * 2             # y bf16 + transpose result
               + pack * cut_j * cut_p * 4         # z f32
               + 2 * pack * cut_j * cut_p * 2)    # out bf16 (double-buffered)
    avail = max(budget - fixed, per_img)
    return int(max(1, min(b, avail // per_img)))


# ----------------------------------------------------------------------------
# Fused forward builder (one jit: cast/pad -> pallas_call -> slice/transpose).
# ----------------------------------------------------------------------------
@functools.lru_cache(maxsize=None)
def _build_forward(n, c, side_y, side_x, cut, cutn):
    b = n * c
    cut_p = _round_up(cut, 128)              # lane-dense per-cutout width
    cut_j = _round_up(cut, 16)               # bf16 sublane tile for the 2nd matmul
    pack = 2 if (cut_p == 128 and cutn >= 2) else 1   # fill 256-wide MXU on v6e/v7x
    n_groups = (cutn + pack - 1) // pack
    n_big = pack * cut_p
    sy_p = _round_up(side_y, 16)             # bf16 sublane alignment
    sx_p = _round_up(side_x, 128)            # lane / matmul-K alignment

    tile_budget, vmem_limit = _vmem_plan()
    b_tile = _choose_batch_tile(b, sy_p, sx_p, cut_j, cut_p, pack, tile_budget)
    b_pad = _round_up(b, b_tile)
    n_bt = b_pad // b_tile

    flops = (2 * n_groups * b_pad * sy_p * sx_p * n_big
             + 2 * n_groups * pack * b_pad * cut_j * sy_p * cut_p)
    bytes_accessed = (b_pad * sy_p * sx_p * 2                       # image (reused across groups)
                      + n_bt * n_groups * (sy_p + sx_p) * n_big * 2 # operator slabs
                      + n_groups * pack * b_pad * cut_j * cut_p * 2)  # bf16 output

    # v7x megacore: with >= 2 batch tiles, shard on the batch-tile axis so the
    # image DMA stays reused across the inner cutout axis (no re-fetch per core).
    dim_sem = ("parallel", "arbitrary") if n_bt >= 2 else ("parallel", "parallel")

    call = pl.pallas_call(
        _cutouts_kernel,
        out_shape=jax.ShapeDtypeStruct((n_groups, pack, b_pad, cut_j, cut_p),
                                       jnp.bfloat16),
        grid=(n_bt, n_groups),   # batch tiles outer, cutout groups inner
        in_specs=[
            pl.BlockSpec((1, pack, sy_p, cut_p), lambda bt, g: (g, 0, 0, 0)),  # Mh^T
            pl.BlockSpec((1, sx_p, n_big), lambda bt, g: (g, 0, 0)),           # Mw^T (packed)
            pl.BlockSpec((b_tile, sy_p, sx_p), lambda bt, g: (bt, 0, 0)),      # image tile
        ],
        out_specs=pl.BlockSpec((1, pack, b_tile, cut_j, cut_p),
                               lambda bt, g: (g, 0, bt, 0, 0)),
        compiler_params=pltpu.CompilerParams(
            dimension_semantics=dim_sem,
            vmem_limit_bytes=vmem_limit),
        cost_estimate=pl.CostEstimate(flops=int(flops), transcendentals=0,
                                      bytes_accessed=int(bytes_accessed)),
    )

    def fwd(x, mht_g, mwt_g):
        # All pre/post processing fused with the kernel in one jit.
        xb = x.reshape(b, side_y, side_x).astype(jnp.bfloat16)
        xb = jnp.pad(xb, ((0, b_pad - b), (0, sy_p - side_y), (0, sx_p - side_x)))
        out = call(mht_g, mwt_g, xb)                      # (ng, pack, b_pad, cut_j, cut_p)
        out = out.reshape(n_groups * pack, b_pad, cut_j, cut_p)
        out = out[:cutn, :b, :cut, :cut]                  # drop zero padding
        out = jnp.swapaxes(out, -1, -2)                   # kernel stored O^T
        out = out.reshape(cutn, n, c, cut, cut).reshape(cutn * n, c, cut, cut)
        return out.astype(jnp.float32)

    cfg = dict(cut_p=cut_p, cut_j=cut_j, pack=pack, n_groups=n_groups,
               sy_p=sy_p, sx_p=sx_p)
    return jax.jit(fwd), cfg


# ----------------------------------------------------------------------------
# MakeCutouts module (forward only).
# ----------------------------------------------------------------------------
class MakeCutouts:
    def __init__(self, cut_size, cutn, cut_pow=1.0, seed=0):
        self.cut_size = cut_size
        self.cutn = cutn
        self.cut_pow = cut_pow
        # TODO(synk): torch.rand/torch.randint are not bit-reproduced; sizes and
        # offsets are drawn from an equivalent distribution with a numpy RNG.
        self._rng = np.random.RandomState(seed)

    def __call__(self, x):
        # x: NCHW float32
        n, c, side_y, side_x = x.shape
        cut = self.cut_size

        fwd, cfg = _build_forward(n, c, side_y, side_x, cut, self.cutn)
        cut_p, pack, n_groups = cfg["cut_p"], cfg["pack"], cfg["n_groups"]
        sy_p, sx_p = cfg["sy_p"], cfg["sx_p"]
        cutn_pad = n_groups * pack

        max_size = min(side_x, side_y)
        min_size = min(side_x, side_y, cut)

        # Bake crop + (Lanczos anti-alias -> bicubic) into per-cutout operators
        # over the FULL (padded) image sides; square crop -> same 1-D operator
        # for H and W, embedded at the crop offsets, zero elsewhere.
        mht = np.zeros((cutn_pad, sy_p, cut_p), dtype=np.float64)
        mwt = np.zeros((cutn_pad, sx_p, cut_p), dtype=np.float64)
        for i in range(self.cutn):
            size = int(self._rng.rand() ** self.cut_pow * (max_size - min_size) + min_size)
            offsetx = int(self._rng.randint(0, side_x - size + 1))
            offsety = int(self._rng.randint(0, side_y - size + 1))
            r_t = _resample_matrix(size, cut).T               # (size, cut)
            mht[i, offsety:offsety + size, :cut] = r_t        # rows (H) operator^T
            mwt[i, offsetx:offsetx + size, :cut] = r_t        # cols (W) operator^T
        # full-precision copies (for reference checks only)
        self._last_ops = (mht[:self.cutn, :side_y, :cut].copy(),
                          mwt[:self.cutn, :side_x, :cut].copy())

        # Pack `pack` cutouts per grid step: Mw^T slabs concatenated along the
        # lane axis (first matmul N = pack*cut_p), Mh^T kept per member.
        mht_g = mht.reshape(n_groups, pack, sy_p, cut_p)
        mwt_g = (mwt.reshape(n_groups, pack, sx_p, cut_p)
                    .transpose(0, 2, 1, 3)
                    .reshape(n_groups, sx_p, pack * cut_p))
        mht_g = jnp.asarray(mht_g.astype(np.float32)).astype(jnp.bfloat16)
        mwt_g = jnp.asarray(mwt_g.astype(np.float32)).astype(jnp.bfloat16)

        # TODO(synk): ClampWithGrad's custom straight-through backward is not
        # implemented; only the forward clamp (fused inside the kernel) is kept.
        return fwd(jnp.asarray(x, dtype=jnp.float32), mht_g, mwt_g)


if __name__ == "__main__":
    key = jax.random.PRNGKey(0)
    x = jax.random.uniform(key, (2, 4, 16, 16), dtype=jnp.float32)  # NCHW

    make_cutouts = MakeCutouts(cut_size=8, cutn=4, cut_pow=1.0, seed=0)
    out = jax.block_until_ready(make_cutouts(x))

    assert out.shape == (4 * 2, 4, 8, 8), out.shape
    assert out.dtype == jnp.float32
    assert bool(jnp.all(out >= 0.0)) and bool(jnp.all(out <= 1.0))

    # Cross-check against a dense float64 reference of the same linear operators.
    mht_f, mwt_f = make_cutouts._last_ops        # (cutn, sideY, cut), (cutn, sideX, cut)
    xr = np.asarray(x, np.float64).reshape(2 * 4, 16, 16)
    ref = np.einsum('nyi,byx,nxj->nbij', mht_f, xr, mwt_f)
    ref = np.clip(ref, 0.0, 1.0).reshape(4, 2, 4, 8, 8).reshape(8, 4, 8, 8)
    err = float(np.max(np.abs(ref - np.asarray(out, np.float64))))
    assert err < 5e-2, err

    print("KERNEL_OK")
</pallas_src>

<mosaic_0001>
module attributes {stable_mosaic.version = 11 : i64} {
  func.func @_cutouts_kernel(%arg0: i32, %arg1: i32, %arg2: memref<1x2x16x128xbf16, #tpu.memory_space<vmem>>, %arg3: memref<1x128x256xbf16, #tpu.memory_space<vmem>>, %arg4: memref<8x16x128xbf16, #tpu.memory_space<vmem>>, %arg5: memref<1x2x8x16x128xbf16, #tpu.memory_space<vmem>>) attributes {dimension_semantics = [#tpu.dimension_semantics<parallel>, #tpu.dimension_semantics<parallel>], iteration_bounds = array<i64: 1, 2>, scalar_prefetch = 0 : i64, scratch_operands = 0 : i64, tpu.core_type = #tpu.core_type<tc>, window_params = [{transform_indices = @transform_0, window_bounds = array<i64: 1, 2, 16, 128>}, {transform_indices = @transform_1, window_bounds = array<i64: 1, 128, 256>}, {transform_indices = @transform_2, window_bounds = array<i64: 8, 16, 128>}, {transform_indices = @transform_3, window_bounds = array<i64: 1, 2, 8, 16, 128>}]} {
    %c0 = arith.constant 0 : index
    %c0_0 = arith.constant 0 : index
    %c0_1 = arith.constant 0 : index
    %0 = vector.load %arg4[%c0, %c0_0, %c0_1] : memref<8x16x128xbf16, #tpu.memory_space<vmem>>, vector<8x16x128xbf16>
    %c0_2 = arith.constant 0 : index
    %c0_3 = arith.constant 0 : index
    %c0_4 = arith.constant 0 : index
    %1 = vector.load %arg3[%c0_2, %c0_3, %c0_4] : memref<1x128x256xbf16, #tpu.memory_space<vmem>>, vector<1x128x256xbf16>
    %2 = vector.shape_cast %1 : vector<1x128x256xbf16> to vector<128x256xbf16>
    %3 = vector.shape_cast %0 : vector<8x16x128xbf16> to vector<128x128xbf16>
    %cst = arith.constant dense<0.000000e+00> : vector<128x256xf32>
    %4 = tpu.matmul %3, %2, %cst {dimension_numbers = #tpu.dot_dimension_numbers<[1], [0], [0], [1], [0, 0, 1, 1], [], []>} : vector<128x128xbf16>, vector<128x256xbf16>, vector<128x256xf32> -> vector<128x256xf32>
    %5 = arith.truncf %4 : vector<128x256xf32> to vector<128x256xbf16>
    %6 = vector.shape_cast %5 : vector<128x256xbf16> to vector<8x16x256xbf16>
    %7 = tpu.transpose %6, [0, 2, 1] : vector<8x16x256xbf16> -> vector<8x256x16xbf16>
    %c0_5 = arith.constant 0 : index
    %c0_6 = arith.constant 0 : index
    %c0_7 = arith.constant 0 : index
    %c0_8 = arith.constant 0 : index
    %8 = vector.load %arg2[%c0_5, %c0_6, %c0_7, %c0_8] : memref<1x2x16x128xbf16, #tpu.memory_space<vmem>>, vector<1x1x16x128xbf16>
    %9 = vector.shape_cast %8 : vector<1x1x16x128xbf16> to vector<16x128xbf16>
    %10 = vector.extract_strided_slice %7 {offsets = [0, 0, 0], sizes = [8, 16, 16], strides = [1, 1, 1]} : vector<8x256x16xbf16> to vector<8x16x16xbf16>
    %11 = vector.shape_cast %10 : vector<8x16x16xbf16> to vector<128x16xbf16>
    %cst_9 = arith.constant dense<0.000000e+00> : vector<128x128xf32>
    %12 = tpu.matmul %11, %9, %cst_9 {dimension_numbers = #tpu.dot_dimension_numbers<[1], [0], [0], [1], [0, 0, 1, 1], [], []>} : vector<128x16xbf16>, vector<16x128xbf16>, vector<128x128xf32> -> vector<128x128xf32>
    %cst_10 = arith.constant 0.000000e+00 : f32
    %cst_11 = arith.constant 1.000000e+00 : f32
    %13 = vector.broadcast %cst_10 : f32 to vector<128x128xf32>
    %14 = arith.maximumf %13, %12 : vector<128x128xf32>
    %15 = vector.broadcast %cst_11 : f32 to vector<128x128xf32>
    %16 = arith.minimumf %15, %14 : vector<128x128xf32>
    %17 = vector.shape_cast %16 : vector<128x128xf32> to vector<8x16x128xf32>
    %18 = arith.truncf %17 : vector<8x16x128xf32> to vector<8x16x128xbf16>
    %c0_12 = arith.constant 0 : index
    %c0_13 = arith.constant 0 : index
    %c0_14 = arith.constant 0 : index
    %c0_15 = arith.constant 0 : index
    %c0_16 = arith.constant 0 : index
    %19 = vector.load %arg5[%c0_12, %c0_13, %c0_14, %c0_15, %c0_16] : memref<1x2x8x16x128xbf16, #tpu.memory_space<vmem>>, vector<1x1x8x16x128xbf16>
    %20 = vector.shape_cast %19 : vector<1x1x8x16x128xbf16> to vector<8x16x128xbf16>
    %21 = vector.shape_cast %18 : vector<8x16x128xbf16> to vector<1x1x8x16x128xbf16>
    tpu.vector_store %arg5[%c0_12, %c0_13, %c0_14, %c0_15, %c0_16], %21 {strides = array<i32>} : memref<1x2x8x16x128xbf16, #tpu.memory_space<vmem>>, vector<1x1x8x16x128xbf16>,
    %c0_17 = arith.constant 0 : index
    %c1 = arith.constant 1 : index
    %c0_18 = arith.constant 0 : index
    %c0_19 = arith.constant 0 : index
    %22 = vector.load %arg2[%c0_17, %c1, %c0_18, %c0_19] : memref<1x2x16x128xbf16, #tpu.memory_space<vmem>>, vector<1x1x16x128xbf16>
    %23 = vector.shape_cast %22 : vector<1x1x16x128xbf16> to vector<16x128xbf16>
    %24 = vector.extract_strided_slice %7 {offsets = [0, 128, 0], sizes = [8, 16, 16], strides = [1, 1, 1]} : vector<8x256x16xbf16> to vector<8x16x16xbf16>
    %25 = vector.shape_cast %24 : vector<8x16x16xbf16> to vector<128x16xbf16>
    %cst_20 = arith.constant dense<0.000000e+00> : vector<128x128xf32>
    %26 = tpu.matmul %25, %23, %cst_20 {dimension_numbers = #tpu.dot_dimension_numbers<[1], [0], [0], [1], [0, 0, 1, 1], [], []>} : vector<128x16xbf16>, vector<16x128xbf16>, vector<128x128xf32> -> vector<128x128xf32>
    %cst_21 = arith.constant 0.000000e+00 : f32
    %cst_22 = arith.constant 1.000000e+00 : f32
    %27 = vector.broadcast %cst_21 : f32 to vector<128x128xf32>
    %28 = arith.maximumf %27, %26 : vector<128x128xf32>
    %29 = vector.broadcast %cst_22 : f32 to vector<128x128xf32>
    %30 = arith.minimumf %29, %28 : vector<128x128xf32>
    %31 = vector.shape_cast %30 : vector<128x128xf32> to vector<8x16x128xf32>
    %32 = arith.truncf %31 : vector<8x16x128xf32> to vector<8x16x128xbf16>
    %c0_23 = arith.constant 0 : index
    %c1_24 = arith.constant 1 : index
    %c0_25 = arith.constant 0 : index
    %c0_26 = arith.constant 0 : index
    %c0_27 = arith.constant 0 : index
    %33 = vector.load %arg5[%c0_23, %c1_24, %c0_25, %c0_26, %c0_27] : memref<1x2x8x16x128xbf16, #tpu.memory_space<vmem>>, vector<1x1x8x16x128xbf16>
    %34 = vector.shape_cast %33 : vector<1x1x8x16x128xbf16> to vector<8x16x128xbf16>
    %35 = vector.shape_cast %32 : vector<8x16x128xbf16> to vector<1x1x8x16x128xbf16>
    tpu.vector_store %arg5[%c0_23, %c1_24, %c0_25, %c0_26, %c0_27], %35 {strides = array<i32>} : memref<1x2x8x16x128xbf16, #tpu.memory_space<vmem>>, vector<1x1x8x16x128xbf16>,
    return
  }
  func.func @transform_0(%arg0: i32, %arg1: i32) -> (i32, i32, i32, i32) {
    %c0_i32 = arith.constant 0 : i32
    %c0_i32_0 = arith.constant 0 : i32
    %c0_i32_1 = arith.constant 0 : i32
    %c0_i32_2 = arith.constant 0 : i32
    return %arg1, %c0_i32, %c0_i32_0, %c0_i32_1 : i32, i32, i32, i32
  }
  func.func @transform_1(%arg0: i32, %arg1: i32) -> (i32, i32, i32) {
    %c0_i32 = arith.constant 0 : i32
    %c0_i32_0 = arith.constant 0 : i32
    %c0_i32_1 = arith.constant 0 : i32
    return %arg1, %c0_i32, %c0_i32_0 : i32, i32, i32
  }
  func.func @transform_2(%arg0: i32, %arg1: i32) -> (i32, i32, i32) {
    %c0_i32 = arith.constant 0 : i32
    %c0_i32_0 = arith.constant 0 : i32
    %c0_i32_1 = arith.constant 0 : i32
    return %arg0, %c0_i32, %c0_i32_0 : i32, i32, i32
  }
  func.func @transform_3(%arg0: i32, %arg1: i32) -> (i32, i32, i32, i32, i32) {
    %c0_i32 = arith.constant 0 : i32
    %c0_i32_0 = arith.constant 0 : i32
    %c0_i32_1 = arith.constant 0 : i32
    %c0_i32_2 = arith.constant 0 : i32
    return %arg1, %c0_i32, %arg0, %c0_i32_0, %c0_i32_1 : i32, i32, i32, i32, i32
  }
}

</mosaic_0001>

<bundles_post_ra>
// kernel: fwd.1
= control target key start
LH: loop header
LB: loop body
LE: loop exit
PB: predicated region body
PF: predicated region fallthrough
CT: control target
= control target key end

     0   :  { %s1540_s12 = smov 0   ;;  %s1542_s13 = smov 0   ;;  %s1680_s0 = inlined_call_operand.vmem [shape: bf16[2,2,16,128], index: 0, kind: input, shape index: {}]   ;;  %s1681_s1 = inlined_call_operand.vmem [shape: bf16[2,128,256], index: 1, kind: input, shape index: {}]   ;;  %s1682_s2 = inlined_call_operand.vmem [shape: bf16[8,16,128], index: 2, kind: input, shape index: {}]   ;;  %s1683_s3 = inlined_call_operand.vmem [shape: bf16[2,2,8,16,128], index: 3, kind: output, shape index: {}]  }
   0x1   :  { %s1544_s14 = smov 0  }
   0x2 LB: > { %s22_s15 = sadd.s32 1, %s1514_s13  ;;  %p1200_p0 = scmp.ge.s32.totalorder %s1518_s14, 1  ;;  %s1518_s14 = sphi %s1544_s14, %s13_s14   ;;  %s1514_s13 = sphi %s1542_s13, %s1685_s13   ;;  %s1510_s12 = sphi %s1540_s12, %s1684_s12  }
   0x3   : > { %p23_p1 = scmp.ge.s32.totalorder %s22_s15, 2  ;;  %p173_p2 = scmp.lt.s32.totalorder %s1518_s14, 3 }
   0x5   : > { %s1687_s15 = smov (%p23_p1, %s22_s15), 0  ;;  %p174_p3 = pnand %p1200_p0, %p173_p2 }
   0x6   : > { %p213_p4 = scmp.lt.s32.totalorder (!%p174_p3), %s1510_s12, 1 }
   0x7   : > { %177 = sbr.rel (%p174_p3) target bundleno = 630 (0x276), region = 32 }
   0xc   : > { %s1689_s12 = smov (!%p213_p4, %s1510_s12), 1  ;;  %v1350_v48 = vld [vmem:[%s1682_s2] sm:$0xff]  ;;  %v1351_v49 = vld [vmem:[%s1682_s2 + $0x8] sm:$0xff]  ;;  %v1352_v50 = vld [vmem:[%s1682_s2 + $0x10] sm:$0xff]  ;;  %vm796_vm0 = vcmask 130048  }
   0xd   : > { %s1348_s16 = sshll.u32 %s1689_s12, 7  ;;  %v1353_v51 = vld [vmem:[%s1682_s2 + $0x18] sm:$0xff]  ;;  %v1354_v52 = vld [vmem:[%s1682_s2 + $0x20] sm:$0xff]  ;;  %v1355_v53 = vld [vmem:[%s1682_s2 + $0x28] sm:$0xff]  ;;  %s1347_s9 = sshll.u32 %s1689_s12, 4 }
   0xe   : > { %s1566_s19 = scalar_lea.vmem %s1681_s1, %s1348_s16  ;;  %v1356_v54 = vld [vmem:[%s1682_s2 + $0x30] sm:$0xff]  ;;  %v1357_v55 = vld [vmem:[%s1682_s2 + $0x38] sm:$0xff]  ;;  %s1628_s17 = scalar_lea.vmem %s1680_s0, %s1347_s9 }
   0xf   : > { %v1297_v0 = vld [vmem:[%s1566_s19 + $0x70] sm:$0xf]  ;;  %v1373_v1 = vld [vmem:[%s1566_s19 + $0x74] sm:$0xf0]  ;;  %v1372_v2 = vld [vmem:[%s1566_s19 + $0x74] sm:$0xf]  ;;  %s1653_s20 = scalar_lea.vmem %s1683_s3, %s1348_s16 }
  0x10   : > { %v1298_v3 = vor.u32 %v1373_v1, %v1297_v0  ;;  %v1299_v4 = vld [vmem:[%s1566_s19 + $0x78] sm:$0xf0]  ;;  %v1289_v5 = vld [vmem:[%s1566_s19 + $0x60] sm:$0xf]  ;;  %v1371_v6 = vld [vmem:[%s1566_s19 + $0x64] sm:$0xf0] }
  0x11   : > { %v1302_v7 = vor.u32 %v1372_v2, %v1299_v4  ;;  %v1370_v8 = vld [vmem:[%s1566_s19 + $0x64] sm:$0xf]  ;;  %v1291_v9 = vld [vmem:[%s1566_s19 + $0x68] sm:$0xf0]  ;;  %v1290_v10 = vor.u32 %v1371_v6, %v1289_v5  ;;  %v1281_v12 = vld [vmem:[%s1566_s19 + $0x50] sm:$0xf] }
  0x12   : > { %402 = vmatpush.bf16.msra.mxu0 %v1298_v3  ;;  %v1294_v11 = vor.u32 %v1370_v8, %v1291_v9  ;;  %v1369_v13 = vld [vmem:[%s1566_s19 + $0x54] sm:$0xf0]  ;;  %v1368_v14 = vld [vmem:[%s1566_s19 + $0x54] sm:$0xf]  ;;  %v1283_v15 = vld [vmem:[%s1566_s19 + $0x58] sm:$0xf0] }
  0x13   : > { %451 = vmatpush.bf16.msra.mxu1 %v1302_v7  ;;  %v1282_v16 = vor.u32 %v1369_v13, %v1281_v12  ;;  %v1286_v17 = vor.u32 %v1368_v14, %v1283_v15  ;;  %v1273_v18 = vld [vmem:[%s1566_s19 + $0x40] sm:$0xf]  ;;  %v1367_v19 = vld [vmem:[%s1566_s19 + $0x44] sm:$0xf0]  ;;  %v1366_v20 = vld [vmem:[%s1566_s19 + $0x44] sm:$0xf] }
  0x14   : > { %v1275_v21 = vld [vmem:[%s1566_s19 + $0x48] sm:$0xf0]  ;;  %v1274_v22 = vor.u32 %v1367_v19, %v1273_v18  ;;  %v1265_v24 = vld [vmem:[%s1566_s19 + $0x30] sm:$0xf]  ;;  %v1365_v25 = vld [vmem:[%s1566_s19 + $0x34] sm:$0xf0] }
  0x15   : > { %v1278_v23 = vor.u32 %v1366_v20, %v1275_v21  ;;  %v1364_v26 = vld [vmem:[%s1566_s19 + $0x34] sm:$0xf]  ;;  %v1267_v27 = vld [vmem:[%s1566_s19 + $0x38] sm:$0xf0]  ;;  %v1266_v28 = vor.u32 %v1365_v25, %v1265_v24  ;;  %v1257_v30 = vld [vmem:[%s1566_s19 + $0x20] sm:$0xf] }
  0x16   : > { %403 = vmatpush.bf16.msra.mxu0 %v1290_v10  ;;  %v1270_v29 = vor.u32 %v1364_v26, %v1267_v27  ;;  %v1363_v31 = vld [vmem:[%s1566_s19 + $0x24] sm:$0xf0]  ;;  %v1362_v32 = vld [vmem:[%s1566_s19 + $0x24] sm:$0xf]  ;;  %v1259_v33 = vld [vmem:[%s1566_s19 + $0x28] sm:$0xf0] }
  0x17   : > { %452 = vmatpush.bf16.msra.mxu1 %v1294_v11  ;;  %v1258_v34 = vor.u32 %v1363_v31, %v1257_v30  ;;  %v1262_v35 = vor.u32 %v1362_v32, %v1259_v33  ;;  %v1249_v36 = vld [vmem:[%s1566_s19 + $0x10] sm:$0xf]  ;;  %v1361_v37 = vld [vmem:[%s1566_s19 + $0x14] sm:$0xf0]  ;;  %v1360_v38 = vld [vmem:[%s1566_s19 + $0x14] sm:$0xf] }
  0x18   : > { %v1251_v39 = vld [vmem:[%s1566_s19 + $0x18] sm:$0xf0]  ;;  %v1250_v40 = vor.u32 %v1361_v37, %v1249_v36  ;;  %v1241_v42 = vld [vmem:[%s1566_s19] sm:$0xf]  ;;  %v1359_v43 = vld [vmem:[%s1566_s19 + $0x4] sm:$0xf0] }
  0x19   : > { %v1254_v41 = vor.u32 %v1360_v38, %v1251_v39  ;;  %v1358_v44 = vld [vmem:[%s1566_s19 + $0x4] sm:$0xf]  ;;  %v1243_v45 = vld [vmem:[%s1566_s19 + $0x8] sm:$0xf0]  ;;  %v1242_v46 = vor.u32 %v1359_v43, %v1241_v42 }
  0x1a   : > { %404 = vmatpush.bf16.msra.mxu0 %v1282_v16  ;;  %v1246_v47 = vor.u32 %v1358_v44, %v1243_v45 }
  0x1b   : > { %453 = vmatpush.bf16.msra.mxu1 %v1286_v17 }
  0x1e   : > { %405 = vmatpush.bf16.msra.mxu0 %v1274_v22 }
  0x1f   : > { %454 = vmatpush.bf16.msra.mxu1 %v1278_v23 }
  0x22   : > { %406 = vmatpush.bf16.msra.mxu0 %v1266_v28 }
  0x23   : > { %455 = vmatpush.bf16.msra.mxu1 %v1270_v29 }
  0x26   : > { %407 = vmatpush.bf16.msra.mxu0 %v1258_v34 }
  0x27   : > { %456 = vmatpush.bf16.msra.mxu1 %v1262_v35 }
  0x2a   : > { %408 = vmatpush.bf16.msra.mxu0 %v1250_v40 }
  0x2b   : > { %457 = vmatpush.bf16.msra.mxu1 %v1254_v41 }
  0x2e   : > { %409 = vmatpush.bf16.msra.mxu0 %v1242_v46 }
  0x2f   : > { %458 = vmatpush.bf16.msra.mxu1 %v1246_v47 }
  0x31   : > { %410 = vmatmul.bf16.vlgmr.msra.gmra.mxu0 %v1350_v48 }
  0x32   : > { %459 = vmatmul.bf16.vlgmr.msra.gmra.mxu1 %v1350_v48 }
  0x41   : > { %415 = vmatmul.bf16.gmra.mxu0 %v1351_v49 }
  0x42   : > { %464 = vmatmul.bf16.gmra.mxu1 %v1351_v49 }
  0x51   : > { %420 = vmatmul.bf16.gmra.mxu0 %v1352_v50 }
  0x52   : > { %469 = vmatmul.bf16.gmra.mxu1 %v1352_v50 }
  0x61   : > { %425 = vmatmul.bf16.gmra.mxu0 %v1353_v51 }
  0x62   : > { %474 = vmatmul.bf16.gmra.mxu1 %v1353_v51 }
  0x71   : > { %430 = vmatmul.bf16.gmra.mxu0 %v1354_v52 }
  0x72   : > { %479 = vmatmul.bf16.gmra.mxu1 %v1354_v52 }
  0x81   : > { %435 = vmatmul.bf16.gmra.mxu0 %v1355_v53 }
  0x82   : > { %484 = vmatmul.bf16.gmra.mxu1 %v1355_v53 }
  0x91   : > { %440 = vmatmul.bf16.gmra.mxu0 %v1356_v54 }
  0x92   : > { %489 = vmatmul.bf16.gmra.mxu1 %v1356_v54 }
  0xa1   : > { %445 = vmatmul.bf16.gmra.mxu0 %v1357_v55 }
  0xa2   : > { %494 = vmatmul.bf16.gmra.mxu1 %v1357_v55 }
  0xae   : > { %v411_v56 = vpop.f32.mrf.mxu0 }
  0xaf   : > { %v460_v57 = vpop.f32.mrf.mxu1 }
  0xb0   : > { %v500_v58 = vpack.c.bf16 %v460_v57, %v411_v56 }
  0xb2   : > { %v532_v62 = vunpack.c.l.b16 %v500_v58  ;;  %v533_v63 = vunpack.c.h.b16 %v500_v58 }
  0xb6   : > { %v413_v59 = vpop.f32.mrf.mxu0 }
  0xb7   : > { %v462_v60 = vpop.f32.mrf.mxu1 }
  0xb8   : > { %v501_v61 = vpack.c.bf16 %v462_v60, %v413_v59 }
  0xba   : > { %v534_v0 = vunpack.c.l.b16 %v501_v61  ;;  %v535_v1 = vunpack.c.h.b16 %v501_v61 }
  0xbc   : > { %v564_v2 = vpack.c.b16 %v534_v0, %v532_v62  ;;  %v565_v3 = vpack.c.b16 %v535_v1, %v533_v63  ;;  %v1374_v1 = vld [vmem:[%s1628_s17] sm:$0xff] }
  0xbd   : > { %828 = vmatpush.bf16.msra.mxu2 %v1374_v1 }
  0xbe   : > { %596 = vxpose.binary.xlu0.c.b16.start.end [1/2] (short) (narrow) %v565_v3, %v564_v2, 16  ;;  %v416_v4 = vpop.f32.mrf.mxu0 }
  0xbf   : > { %v465_v5 = vpop.f32.mrf.mxu1 }
  0xc0   : > { %v502_v6 = vpack.c.bf16 %v465_v5, %v416_v4 }
  0xc2   : > { %v536_v10 = vunpack.c.l.b16 %v502_v6  ;;  %v537_v11 = vunpack.c.h.b16 %v502_v6 }
  0xc6   : > { %v418_v7 = vpop.f32.mrf.mxu0 }
  0xc7   : > { %v467_v8 = vpop.f32.mrf.mxu1 }
  0xc8   : > { %v503_v9 = vpack.c.bf16 %v467_v8, %v418_v7 }
  0xca   : > { %v538_v12 = vunpack.c.l.b16 %v503_v9  ;;  %v539_v13 = vunpack.c.h.b16 %v503_v9 }
  0xcc   : > { %v566_v14 = vpack.c.b16 %v538_v12, %v536_v10  ;;  %v567_v15 = vpack.c.b16 %v539_v13, %v537_v11 }
  0xce   : > { %620 = vxpose.binary.xlu0.c.b16.start.end [1/2] (short) (narrow) %v567_v15, %v566_v14, 16  ;;  %v421_v16 = vpop.f32.mrf.mxu0 }
  0xcf   : > { %v470_v17 = vpop.f32.mrf.mxu1 }
  0xd0   : > { %v504_v18 = vpack.c.bf16 %v470_v17, %v421_v16 }
  0xd2   : > { %v540_v22 = vunpack.c.l.b16 %v504_v18  ;;  %v541_v23 = vunpack.c.h.b16 %v504_v18 }
  0xd6   : > { %v423_v19 = vpop.f32.mrf.mxu0 }
  0xd7   : > { %v472_v20 = vpop.f32.mrf.mxu1 }
  0xd8   : > { %v505_v21 = vpack.c.bf16 %v472_v20, %v423_v19 }
  0xda   : > { %v542_v24 = vunpack.c.l.b16 %v505_v21  ;;  %v543_v25 = vunpack.c.h.b16 %v505_v21 }
  0xdc   : > { %v568_v26 = vpack.c.b16 %v542_v24, %v540_v22  ;;  %v569_v27 = vpack.c.b16 %v543_v25, %v541_v23  ;;  %v1375_v25 = vld [vmem:[%s1628_s17 + $0x8] sm:$0xff] }
  0xdd   : > { %974 = vmatpush.bf16.msra.mxu3 %v1375_v25 }
  0xde   : > { %644 = vxpose.binary.xlu1.c.b16.start.end [1/2] (short) (narrow) %v569_v27, %v568_v26, 16  ;;  %v426_v28 = vpop.f32.mrf.mxu0 }
  0xdf   : > { %v475_v29 = vpop.f32.mrf.mxu1 }
  0xe0   : > { %v506_v30 = vpack.c.bf16 %v475_v29, %v426_v28 }
  0xe2   : > { %v544_v34 = vunpack.c.l.b16 %v506_v30  ;;  %v545_v35 = vunpack.c.h.b16 %v506_v30 }
  0xe6   : > { %v428_v31 = vpop.f32.mrf.mxu0 }
  0xe7   : > { %v477_v32 = vpop.f32.mrf.mxu1 }
  0xe8   : > { %v507_v33 = vpack.c.bf16 %v477_v32, %v428_v31 }
  0xea   : > { %v546_v36 = vunpack.c.l.b16 %v507_v33  ;;  %v547_v37 = vunpack.c.h.b16 %v507_v33 }
  0xec   : > { %v570_v38 = vpack.c.b16 %v546_v36, %v544_v34  ;;  %v571_v39 = vpack.c.b16 %v547_v37, %v545_v35 }
  0xee   : > { %668 = vxpose.binary.xlu1.c.b16.start.end [1/2] (short) (narrow) %v571_v39, %v570_v38, 16  ;;  %v431_v40 = vpop.f32.mrf.mxu0 }
  0xef   : > { %v480_v41 = vpop.f32.mrf.mxu1 }
  0xf0   : > { %v508_v42 = vpack.c.bf16 %v480_v41, %v431_v40 }
  0xf2   : > { %v548_v46 = vunpack.c.l.b16 %v508_v42  ;;  %v549_v47 = vunpack.c.h.b16 %v508_v42 }
  0xf6   : > { %v433_v43 = vpop.f32.mrf.mxu0 }
  0xf7   : > { %v482_v44 = vpop.f32.mrf.mxu1 }
  0xf8   : > { %v509_v45 = vpack.c.bf16 %v482_v44, %v433_v43 }
  0xfa   : > { %v550_v48 = vunpack.c.l.b16 %v509_v45  ;;  %v551_v49 = vunpack.c.h.b16 %v509_v45 }
  0xfc   : > { %v572_v50 = vpack.c.b16 %v550_v48, %v548_v46  ;;  %v573_v51 = vpack.c.b16 %v551_v49, %v549_v47 }
  0xfe   : > { %692 = vxpose.binary.xlu2.c.b16.start.end [1/2] (short) (narrow) %v573_v51, %v572_v50, 16  ;;  %v436_v52 = vpop.f32.mrf.mxu0 }
  0xff   : > { %v485_v53 = vpop.f32.mrf.mxu1 }
 0x100   : > { %v510_v54 = vpack.c.bf16 %v485_v53, %v436_v52 }
 0x102   : > { %v552_v58 = vunpack.c.l.b16 %v510_v54  ;;  %v553_v59 = vunpack.c.h.b16 %v510_v54 }
 0x106   : > { %v438_v55 = vpop.f32.mrf.mxu0 }
 0x107   : > { %v487_v56 = vpop.f32.mrf.mxu1 }
 0x108   : > { %v511_v57 = vpack.c.bf16 %v487_v56, %v438_v55 }
 0x10a   : > { %v554_v60 = vunpack.c.l.b16 %v511_v57  ;;  %v555_v61 = vunpack.c.h.b16 %v511_v57 }
 0x10c   : > { %v574_v62 = vpack.c.b16 %v554_v60, %v552_v58  ;;  %v575_v63 = vpack.c.b16 %v555_v61, %v553_v59 }
 0x10e   : > { %716 = vxpose.binary.xlu2.c.b16.start.end [1/2] (short) (narrow) %v575_v63, %v574_v62, 16  ;;  %v441_v0 = vpop.f32.mrf.mxu0 }
 0x10f   : > { %v490_v2 = vpop.f32.mrf.mxu1 }
 0x110   : > { %v512_v3 = vpack.c.bf16 %v490_v2, %v441_v0 }
 0x112   : > { %v556_v7 = vunpack.c.l.b16 %v512_v3  ;;  %v557_v8 = vunpack.c.h.b16 %v512_v3 }
 0x116   : > { %v443_v4 = vpop.f32.mrf.mxu0 }
 0x117   : > { %v492_v5 = vpop.f32.mrf.mxu1 }
 0x118   : > { %v513_v6 = vpack.c.bf16 %v492_v5, %v443_v4 }
 0x11a   : > { %v558_v9 = vunpack.c.l.b16 %v513_v6  ;;  %v559_v10 = vunpack.c.h.b16 %v513_v6 }
 0x11c   : > { %v576_v11 = vpack.c.b16 %v558_v9, %v556_v7  ;;  %v577_v12 = vpack.c.b16 %v559_v10, %v557_v8 }
 0x11e   : > { %740 = vxpose.binary.xlu0.c.b16.start.end [1/2] (short) (narrow) %v577_v12, %v576_v11, 16  ;;  %v446_v13 = vpop.f32.mrf.mxu0 }
 0x11f   : > { %v495_v14 = vpop.f32.mrf.mxu1 }
 0x120   : > { %v514_v15 = vpack.c.bf16 %v495_v14, %v446_v13 }
 0x122   : > { %v560_v19 = vunpack.c.l.b16 %v514_v15  ;;  %v561_v20 = vunpack.c.h.b16 %v514_v15 }
 0x126   : > { %v448_v16 = vpop.f32.mrf.mxu0 }
 0x127   : > { %v497_v17 = vpop.f32.mrf.mxu1 }
 0x128   : > { %v515_v18 = vpack.c.bf16 %v497_v17, %v448_v16 }
 0x12a   : > { %v562_v21 = vunpack.c.l.b16 %v515_v18  ;;  %v563_v22 = vunpack.c.h.b16 %v515_v18 }
 0x12c   : > { %v578_v23 = vpack.c.b16 %v562_v21, %v560_v19  ;;  %v579_v24 = vpack.c.b16 %v563_v22, %v561_v20 }
 0x12e   : > { %764 = vxpose.binary.xlu1.c.b16.start.end [1/2] (short) (narrow) %v579_v24, %v578_v23, 16 }
 0x16a   : > { %v604_v26 = vpop.trf.xlu0 }
 0x16b   : > { %1307 = vmatmul.msk.bf16.vlgmr.msra.gmra.mxu2 %vm796_vm0, %v604_v26 }
 0x172   : > { %v605_v27 = vpop.trf.xlu0 }
 0x173   : > { %1321 = vmatmul.msk.bf16.vlgmr.msra.gmra.mxu3 %vm796_vm0, %v605_v27 }
 0x17a   : > { %v628_v28 = vpop.trf.xlu0 }
 0x17b   : > { %1308 = vmatmul.msk.bf16.gmra.mxu2 %vm796_vm0, %v628_v28 }
 0x182   : > { %v629_v29 = vpop.trf.xlu0 }
 0x183   : > { %1322 = vmatmul.msk.bf16.gmra.mxu3 %vm796_vm0, %v629_v29 }
 0x18a   : > { %v652_v30 = vpop.trf.xlu1 }
 0x18b   : > { %1309 = vmatmul.msk.bf16.gmra.mxu2 %vm796_vm0, %v652_v30 }
 0x192   : > { %v653_v31 = vpop.trf.xlu1 }
 0x193   : > { %1323 = vmatmul.msk.bf16.gmra.mxu3 %vm796_vm0, %v653_v31 }
 0x19a   : > { %v676_v32 = vpop.trf.xlu1 }
 0x19b   : > { %1310 = vmatmul.msk.bf16.gmra.mxu2 %vm796_vm0, %v676_v32 }
 0x19f   : > { %v700_v34 = vpop.trf.xlu2 }
 0x1a2   : > { %v677_v33 = vpop.trf.xlu1 }
 0x1a3   : > { %1324 = vmatmul.msk.bf16.gmra.mxu3 %vm796_vm0, %v677_v33 }
 0x1a7   : > { %v701_v35 = vpop.trf.xlu2 }
 0x1ab   : > { %1311 = vmatmul.msk.bf16.gmra.mxu2 %vm796_vm0, %v700_v34 }
 0x1af   : > { %v724_v36 = vpop.trf.xlu2 }
 0x1b3   : > { %1325 = vmatmul.msk.bf16.gmra.mxu3 %vm796_vm0, %v701_v35 }
 0x1b7   : > { %v725_v37 = vpop.trf.xlu2 }
 0x1bb   : > { %1312 = vmatmul.msk.bf16.gmra.mxu2 %vm796_vm0, %v724_v36 }
 0x1c3   : > { %1326 = vmatmul.msk.bf16.gmra.mxu3 %vm796_vm0, %v725_v37 }
 0x1ca   : > { %v748_v38 = vpop.trf.xlu0 }
 0x1cb   : > { %1313 = vmatmul.msk.bf16.gmra.mxu2 %vm796_vm0, %v748_v38 }
 0x1d2   : > { %v749_v39 = vpop.trf.xlu0 }
 0x1d3   : > { %1327 = vmatmul.msk.bf16.gmra.mxu3 %vm796_vm0, %v749_v39 }
 0x1da   : > { %v772_v40 = vpop.trf.xlu1 }
 0x1db   : > { %1314 = vmatmul.msk.bf16.gmra.mxu2 %vm796_vm0, %v772_v40 }
 0x1e2   : > { %v773_v41 = vpop.trf.xlu1 }
 0x1e3   : > { %1328 = vmatmul.msk.bf16.gmra.mxu3 %vm796_vm0, %v773_v41 }
 0x1ee   : > { %v830_v42 = vpop.f32.mrf.mxu2 }
 0x1ef   : > { %v870_v43 = vmax.f32 %v830_v42, 0.0 }
 0x1f1   : > { %v886_v47 = vmin.f32 %v870_v43, 1.0 }
 0x1f6   : > { %v832_v44 = vpop.f32.mrf.mxu2  ;;  %v976_v45 = vpop.f32.mrf.mxu3 }
 0x1f7   : > { %v871_v46 = vmax.f32 %v832_v44, 0.0  ;;  %v1016_v50 = vmax.f32 %v976_v45, 0.0 }
 0x1f9   : > { %v887_v48 = vmin.f32 %v871_v46, 1.0  ;;  %v1032_v54 = vmin.f32 %v1016_v50, 1.0 }
 0x1fb   : > { %v1379_v49 = vpack.c.bf16 %v887_v48, %v886_v47 }
 0x1fd   : > { %1380 = vst [vmem:[%s1653_s20] sm:$0xff] %v1379_v49  }
 0x1fe   : > { %v835_v51 = vpop.f32.mrf.mxu2  ;;  %v978_v52 = vpop.f32.mrf.mxu3 }
 0x1ff   : > { %v1017_v53 = vmax.f32 %v978_v52, 0.0  ;;  %v872_v57 = vmax.f32 %v835_v51, 0.0 }
 0x201   : > { %v1033_v55 = vmin.f32 %v1017_v53, 1.0  ;;  %v888_v61 = vmin.f32 %v872_v57, 1.0 }
 0x203   : > { %v1419_v56 = vpack.c.bf16 %v1033_v55, %v1032_v54 }
 0x205   : > { %1463 = vst [vmem:[%s1653_s20 + $0x40] sm:$0xff] %v1419_v56  }
 0x206   : > { %v837_v58 = vpop.f32.mrf.mxu2  ;;  %v981_v59 = vpop.f32.mrf.mxu3 }
 0x207   : > { %v873_v60 = vmax.f32 %v837_v58, 0.0  ;;  %v1018_v0 = vmax.f32 %v981_v59, 0.0 }
 0x209   : > { %v889_v62 = vmin.f32 %v873_v60, 1.0  ;;  %v1034_v4 = vmin.f32 %v1018_v0, 1.0 }
 0x20b   : > { %v1384_v63 = vpack.c.bf16 %v889_v62, %v888_v61 }
 0x20d   : > { %1456 = vst [vmem:[%s1653_s20 + $0x8] sm:$0xff] %v1384_v63  }
 0x20e   : > { %v840_v1 = vpop.f32.mrf.mxu2  ;;  %v983_v2 = vpop.f32.mrf.mxu3 }
 0x20f   : > { %v1019_v3 = vmax.f32 %v983_v2, 0.0  ;;  %v874_v7 = vmax.f32 %v840_v1, 0.0 }
 0x211   : > { %v1035_v5 = vmin.f32 %v1019_v3, 1.0  ;;  %v890_v11 = vmin.f32 %v874_v7, 1.0 }
 0x213   : > { %v1424_v6 = vpack.c.bf16 %v1035_v5, %v1034_v4 }
 0x215   : > { %1464 = vst [vmem:[%s1653_s20 + $0x48] sm:$0xff] %v1424_v6  }
 0x216   : > { %v842_v8 = vpop.f32.mrf.mxu2  ;;  %v986_v9 = vpop.f32.mrf.mxu3 }
 0x217   : > { %v875_v10 = vmax.f32 %v842_v8, 0.0  ;;  %v1020_v14 = vmax.f32 %v986_v9, 0.0 }
 0x219   : > { %v891_v12 = vmin.f32 %v875_v10, 1.0  ;;  %v1036_v18 = vmin.f32 %v1020_v14, 1.0 }
 0x21b   : > { %v1389_v13 = vpack.c.bf16 %v891_v12, %v890_v11 }
 0x21d   : > { %1457 = vst [vmem:[%s1653_s20 + $0x10] sm:$0xff] %v1389_v13  }
 0x21e   : > { %v845_v15 = vpop.f32.mrf.mxu2  ;;  %v988_v16 = vpop.f32.mrf.mxu3 }
 0x21f   : > { %v1021_v17 = vmax.f32 %v988_v16, 0.0  ;;  %v876_v21 = vmax.f32 %v845_v15, 0.0 }
 0x221   : > { %v1037_v19 = vmin.f32 %v1021_v17, 1.0  ;;  %v892_v25 = vmin.f32 %v876_v21, 1.0 }
 0x223   : > { %v1429_v20 = vpack.c.bf16 %v1037_v19, %v1036_v18 }
 0x225   : > { %1465 = vst [vmem:[%s1653_s20 + $0x50] sm:$0xff] %v1429_v20  }
 0x226   : > { %v847_v22 = vpop.f32.mrf.mxu2  ;;  %v991_v23 = vpop.f32.mrf.mxu3 }
 0x227   : > { %v877_v24 = vmax.f32 %v847_v22, 0.0  ;;  %v1022_v28 = vmax.f32 %v991_v23, 0.0 }
 0x229   : > { %v893_v26 = vmin.f32 %v877_v24, 1.0  ;;  %v1038_v32 = vmin.f32 %v1022_v28, 1.0 }
 0x22b   : > { %v1394_v27 = vpack.c.bf16 %v893_v26, %v892_v25 }
 0x22d   : > { %1458 = vst [vmem:[%s1653_s20 + $0x18] sm:$0xff] %v1394_v27  }
 0x22e   : > { %v850_v29 = vpop.f32.mrf.mxu2  ;;  %v993_v30 = vpop.f32.mrf.mxu3 }
 0x22f   : > { %v1023_v31 = vmax.f32 %v993_v30, 0.0  ;;  %v878_v35 = vmax.f32 %v850_v29, 0.0 }
 0x231   : > { %v1039_v33 = vmin.f32 %v1023_v31, 1.0  ;;  %v894_v39 = vmin.f32 %v878_v35, 1.0 }
 0x233   : > { %v1434_v34 = vpack.c.bf16 %v1039_v33, %v1038_v32 }
 0x235   : > { %1466 = vst [vmem:[%s1653_s20 + $0x58] sm:$0xff] %v1434_v34  }
 0x236   : > { %v852_v36 = vpop.f32.mrf.mxu2  ;;  %v996_v37 = vpop.f32.mrf.mxu3 }
 0x237   : > { %v879_v38 = vmax.f32 %v852_v36, 0.0  ;;  %v1024_v42 = vmax.f32 %v996_v37, 0.0 }
 0x239   : > { %v895_v40 = vmin.f32 %v879_v38, 1.0  ;;  %v1040_v46 = vmin.f32 %v1024_v42, 1.0 }
 0x23b   : > { %v1399_v41 = vpack.c.bf16 %v895_v40, %v894_v39 }
 0x23d   : > { %1459 = vst [vmem:[%s1653_s20 + $0x20] sm:$0xff] %v1399_v41  }
 0x23e   : > { %v855_v43 = vpop.f32.mrf.mxu2  ;;  %v998_v44 = vpop.f32.mrf.mxu3 }
 0x23f   : > { %v1025_v45 = vmax.f32 %v998_v44, 0.0  ;;  %v880_v49 = vmax.f32 %v855_v43, 0.0 }
 0x241   : > { %v1041_v47 = vmin.f32 %v1025_v45, 1.0  ;;  %v896_v53 = vmin.f32 %v880_v49, 1.0 }
 0x243   : > { %v1439_v48 = vpack.c.bf16 %v1041_v47, %v1040_v46 }
 0x245   : > { %1467 = vst [vmem:[%s1653_s20 + $0x60] sm:$0xff] %v1439_v48  }
 0x246   : > { %v857_v50 = vpop.f32.mrf.mxu2  ;;  %v1001_v51 = vpop.f32.mrf.mxu3 }
 0x247   : > { %v881_v52 = vmax.f32 %v857_v50, 0.0  ;;  %v1026_v56 = vmax.f32 %v1001_v51, 0.0 }
 0x249   : > { %v897_v54 = vmin.f32 %v881_v52, 1.0  ;;  %v1042_v60 = vmin.f32 %v1026_v56, 1.0 }
 0x24b   : > { %v1404_v55 = vpack.c.bf16 %v897_v54, %v896_v53 }
 0x24d   : > { %1460 = vst [vmem:[%s1653_s20 + $0x28] sm:$0xff] %v1404_v55  }
 0x24e   : > { %v860_v57 = vpop.f32.mrf.mxu2  ;;  %v1003_v58 = vpop.f32.mrf.mxu3 }
 0x24f   : > { %v1027_v59 = vmax.f32 %v1003_v58, 0.0  ;;  %v882_v63 = vmax.f32 %v860_v57, 0.0 }
 0x251   : > { %v1043_v61 = vmin.f32 %v1027_v59, 1.0  ;;  %v898_v3 = vmin.f32 %v882_v63, 1.0 }
 0x253   : > { %v1444_v62 = vpack.c.bf16 %v1043_v61, %v1042_v60 }
 0x255   : > { %1468 = vst [vmem:[%s1653_s20 + $0x68] sm:$0xff] %v1444_v62  }
 0x256   : > { %v862_v0 = vpop.f32.mrf.mxu2  ;;  %v1006_v1 = vpop.f32.mrf.mxu3 }
 0x257   : > { %v883_v2 = vmax.f32 %v862_v0, 0.0  ;;  %v1028_v6 = vmax.f32 %v1006_v1, 0.0 }
 0x259   : > { %v899_v4 = vmin.f32 %v883_v2, 1.0  ;;  %v1044_v10 = vmin.f32 %v1028_v6, 1.0 }
 0x25b   : > { %v1409_v5 = vpack.c.bf16 %v899_v4, %v898_v3 }
 0x25d   : > { %1461 = vst [vmem:[%s1653_s20 + $0x30] sm:$0xff] %v1409_v5  }
 0x25e   : > { %v865_v7 = vpop.f32.mrf.mxu2  ;;  %v1008_v8 = vpop.f32.mrf.mxu3 }
 0x25f   : > { %v1029_v9 = vmax.f32 %v1008_v8, 0.0  ;;  %v884_v13 = vmax.f32 %v865_v7, 0.0 }
 0x261   : > { %v1045_v11 = vmin.f32 %v1029_v9, 1.0  ;;  %v900_v17 = vmin.f32 %v884_v13, 1.0 }
 0x263   : > { %v1449_v12 = vpack.c.bf16 %v1045_v11, %v1044_v10 }
 0x265   : > { %1469 = vst [vmem:[%s1653_s20 + $0x70] sm:$0xff] %v1449_v12  }
 0x266   : > { %v867_v14 = vpop.f32.mrf.mxu2  ;;  %v1011_v15 = vpop.f32.mrf.mxu3 }
 0x267   : > { %v885_v16 = vmax.f32 %v867_v14, 0.0  ;;  %v1030_v20 = vmax.f32 %v1011_v15, 0.0 }
 0x269   : > { %v901_v18 = vmin.f32 %v885_v16, 1.0  ;;  %v1046_v23 = vmin.f32 %v1030_v20, 1.0 }
 0x26b   : > { %v1414_v19 = vpack.c.bf16 %v901_v18, %v900_v17 }
 0x26d   : > { %1462 = vst [vmem:[%s1653_s20 + $0x38] sm:$0xff] %v1414_v19  }
 0x26e   : > { %v1013_v21 = vpop.f32.mrf.mxu3 }
 0x26f   : > { %v1031_v22 = vmax.f32 %v1013_v21, 0.0 }
 0x271   : > { %v1047_v24 = vmin.f32 %v1031_v22, 1.0 }
 0x273   : > { %v1454_v25 = vpack.c.bf16 %v1047_v24, %v1046_v23 }
 0x275   : > { %1470 = vst [vmem:[%s1653_s20 + $0x78] sm:$0xff] %v1454_v25  }
 0x276 PF: > { %s13_s14 = sadd.s32 1, %s1518_s14   ;;  %s1684_s12 = smov %s1514_s13 }
 0x277   : > { %p10_p5 = scmp.ge.s32.totalorder %s13_s14, 4   ;;  %s1685_s13 = smov %s1687_s15 }
 0x279   :  { %12 = sbr.rel (!%p10_p5) target bundleno = 2 (0x2), region = 70 }

</bundles_post_ra>
